<compile_context>
chip_gen: v6e
topology: v6e:2x2x1
jax: 0.10.0
libtpu: 0.0.40
codegen_flags: <defaults>
</compile_context>

<pallas_src>
import functools

import jax
import jax.numpy as jnp
from jax.experimental import pallas as pl
from jax.experimental.pallas import tpu as pltpu


def _patch_proj_kernel(x_ref, w_ref, b_ref, o_ref):
    # x_ref: (TM, K) flattened patches, w_ref: (K, N), b_ref: (1, N)
    acc = jnp.dot(x_ref[...], w_ref[...], preferred_element_type=jnp.float32)
    o_ref[...] = (acc + b_ref[...]).astype(o_ref.dtype)


def patch_proj_pallas(patches, w_flat, bias2d, *, tm_target=2048):
    """patches: (M, K) f32, w_flat: (K, N) f32, bias2d: (1, N) f32 -> (M, N) f32."""
    M, K = patches.shape
    _, N = w_flat.shape

    if M <= tm_target:
        # Single block: TM == M uses the "equals full array dim" escape from
        # the (8, 128) divisibility rule, so any small M is fine.
        tm = M
    else:
        # Tiled path: TM is a multiple of 8; the ragged final tile is handled
        # by pl.cdiv + Pallas's masked writeback of out-of-bounds rows.
        tm = tm_target
    grid_m = pl.cdiv(M, tm)

    cost = pl.CostEstimate(
        flops=2 * M * K * N,
        transcendentals=0,
        bytes_accessed=4 * (M * K + K * N + M * N),
    )

    return pl.pallas_call(
        _patch_proj_kernel,
        out_shape=jax.ShapeDtypeStruct((M, N), patches.dtype),
        grid=(grid_m,),
        in_specs=[
            pl.BlockSpec((tm, K), lambda i: (i, 0)),
            # Constant index_map -> weight/bias stay VMEM-resident (no re-DMA
            # across grid iterations).
            pl.BlockSpec((K, N), lambda i: (0, 0)),
            pl.BlockSpec((1, N), lambda i: (0, 0)),
        ],
        out_specs=pl.BlockSpec((tm, N), lambda i: (i, 0)),
        compiler_params=pltpu.CompilerParams(
            dimension_semantics=("parallel",),
        ),
        cost_estimate=cost,
    )(patches, w_flat, bias2d)


@functools.partial(jax.jit, static_argnums=(3,))
def _patch_embed_forward(x, w_flat, bias2d, patch_size):
    B, C, H, W = x.shape
    ps = patch_size
    pad_h = (-H) % ps
    pad_w = (-W) % ps
    if pad_h or pad_w:
        x = jnp.pad(x, ((0, 0), (0, 0), (0, pad_h), (0, pad_w)))
    Ph = (H + pad_h) // ps
    Pw = (W + pad_w) // ps

    # im2col: (B,C,Ph,ps,Pw,ps) -> (B,Ph,Pw,C,ps,ps) -> (M, K).  Done inside
    # the same jit as the pallas_call so pad+transpose fuse into one program.
    # TODO(synk): fold the patch extraction into the kernel's BlockSpec (needs
    # an NHWC-style slab layout + in-kernel shuffle) to remove the remaining
    # input-sized HBM round trip of the materialized patches array.
    xp = x.reshape(B, C, Ph, ps, Pw, ps)
    xp = jnp.transpose(xp, (0, 2, 4, 1, 3, 5))
    patches = xp.reshape(B * Ph * Pw, C * ps * ps)

    out = patch_proj_pallas(patches, w_flat, bias2d)          # (M, N)
    return out.reshape(B, Ph * Pw, w_flat.shape[1])           # (B, L, embed_dims)


class PatchEmbedPallas:
    """JAX/Pallas port of swin.PatchEmbed (norm_layer=None)."""

    def __init__(self, patch_size=4, in_channels=3, embed_dims=96, key=None):
        self.patch_size = patch_size
        self.in_channels = in_channels
        self.embed_dims = embed_dims
        if key is None:
            key = jax.random.PRNGKey(0)
        kw, kb = jax.random.split(key)
        # Conv2d weight: (embed_dims, C, ps, ps), bias: (embed_dims,) — PyTorch init.
        fan_in = in_channels * patch_size * patch_size
        bound = 1.0 / (fan_in ** 0.5)
        self.w = jax.random.uniform(
            kw, (embed_dims, in_channels, patch_size, patch_size),
            minval=-bound, maxval=bound, dtype=jnp.float32)
        self.b = jax.random.uniform(
            kb, (embed_dims,), minval=-bound, maxval=bound, dtype=jnp.float32)
        # Precompute matmul-form parameters once (no per-call transpose/reshape).
        self.w_flat = jnp.transpose(
            self.w.reshape(embed_dims, in_channels * patch_size * patch_size))  # (K, N)
        self.bias2d = self.b.reshape(1, embed_dims)                              # (1, N)
        # TODO(synk): norm_layer (e.g. LayerNorm) not implemented; module default is None.

    def __call__(self, x):
        # x: (B, C, H, W) float32 (NCHW, same as PyTorch)
        _, _, H, W = x.shape
        ps = self.patch_size
        Ph = (H + (-H) % ps) // ps
        Pw = (W + (-W) % ps) // ps
        out = _patch_embed_forward(x, self.w_flat, self.bias2d, ps)
        return out, Ph, Pw


def _reference(x, w, b, ps):
    """Pure-JAX reference (strided conv via lax) to validate semantics."""
    B, _, H, W = x.shape
    pad_h = (-H) % ps
    pad_w = (-W) % ps
    Ph = (H + pad_h) // ps
    Pw = (W + pad_w) // ps
    ref = jax.lax.conv_general_dilated(
        x, w, window_strides=(ps, ps),
        padding=((0, pad_h), (0, pad_w)),
        dimension_numbers=("NCHW", "OIHW", "NCHW"))
    ref = ref + b[None, :, None, None]
    return ref.reshape(B, w.shape[0], Ph * Pw).transpose(0, 2, 1), Ph, Pw


if __name__ == "__main__":
    key = jax.random.PRNGKey(0)
    k_in, k_in2, k_params = jax.random.split(key, 3)

    patch_size, embed_dims, C = 4, 32, 3
    module = PatchEmbedPallas(patch_size=patch_size, in_channels=C,
                              embed_dims=embed_dims, key=k_params)

    # Case 1: small, non-multiple spatial size (exercises padding; single tile).
    B, H, W = 2, 18, 18
    x = jax.random.normal(k_in, (B, C, H, W), dtype=jnp.float32)
    out, Ph, Pw = module(x)
    out = jax.block_until_ready(out)
    ref, Ph_r, Pw_r = _reference(x, module.w, module.b, patch_size)
    assert out.shape == (B, Ph * Pw, embed_dims), out.shape
    assert (Ph, Pw) == (Ph_r, Pw_r), (Ph, Pw, Ph_r, Pw_r)
    assert jnp.allclose(out, ref, atol=1e-4, rtol=1e-4), float(jnp.abs(out - ref).max())

    # Case 2: exercise the M-tiled (grid > 1, ragged final tile) matmul path.
    B2, H2, W2 = 2, 68, 68                       # Ph = Pw = 17 -> M = 2*289 = 578
    x2 = jax.random.normal(k_in2, (B2, C, H2, W2), dtype=jnp.float32)
    xp = x2.reshape(B2, C, 17, patch_size, 17, patch_size)
    xp = jnp.transpose(xp, (0, 2, 4, 1, 3, 5)).reshape(
        B2 * 17 * 17, C * patch_size * patch_size)
    out2 = patch_proj_pallas(xp, module.w_flat, module.bias2d, tm_target=128)
    out2 = jax.block_until_ready(out2)
    ref2 = xp @ module.w_flat + module.bias2d
    assert jnp.allclose(out2, ref2, atol=1e-4, rtol=1e-4), float(jnp.abs(out2 - ref2).max())

    print("KERNEL_OK")
</pallas_src>

<mosaic_0001>
module attributes {stable_mosaic.version = 11 : i64} {
  func.func @_patch_proj_kernel(%arg0: i32, %arg1: memref<50x48xf32, #tpu.memory_space<vmem>>, %arg2: memref<48x32xf32, #tpu.memory_space<vmem>>, %arg3: memref<1x32xf32, #tpu.memory_space<vmem>>, %arg4: memref<50x32xf32, #tpu.memory_space<vmem>>) attributes {dimension_semantics = [#tpu.dimension_semantics<parallel>], iteration_bounds = array<i64: 1>, scalar_prefetch = 0 : i64, scratch_operands = 0 : i64, tpu.core_type = #tpu.core_type<tc>, window_params = [{transform_indices = @transform_0, window_bounds = array<i64: 50, 48>}, {pipeline_mode = #tpu.pipeline_mode<synchronous>, transform_indices = @transform_1, window_bounds = array<i64: 48, 32>}, {pipeline_mode = #tpu.pipeline_mode<synchronous>, transform_indices = @transform_2, window_bounds = array<i64: 1, 32>}, {transform_indices = @transform_3, window_bounds = array<i64: 50, 32>}]} {
    %c0 = arith.constant 0 : index
    %c0_0 = arith.constant 0 : index
    %0 = vector.load %arg1[%c0, %c0_0] : memref<50x48xf32, #tpu.memory_space<vmem>>, vector<50x48xf32>
    %c0_1 = arith.constant 0 : index
    %c0_2 = arith.constant 0 : index
    %1 = vector.load %arg2[%c0_1, %c0_2] : memref<48x32xf32, #tpu.memory_space<vmem>>, vector<48x32xf32>
    %cst = arith.constant dense<0.000000e+00> : vector<50x32xf32>
    %2 = tpu.matmul %0, %1, %cst {dimension_numbers = #tpu.dot_dimension_numbers<[1], [0], [0], [1], [0, 0, 1, 1], [], []>} : vector<50x48xf32>, vector<48x32xf32>, vector<50x32xf32> -> vector<50x32xf32>
    %c0_3 = arith.constant 0 : index
    %c0_4 = arith.constant 0 : index
    %3 = vector.load %arg3[%c0_3, %c0_4] : memref<1x32xf32, #tpu.memory_space<vmem>>, vector<1x32xf32>
    %4 = vector.broadcast %3 : vector<1x32xf32> to vector<50x32xf32>
    %5 = arith.addf %2, %4 : vector<50x32xf32>
    %c0_5 = arith.constant 0 : index
    %c0_6 = arith.constant 0 : index
    %6 = vector.load %arg4[%c0_5, %c0_6] : memref<50x32xf32, #tpu.memory_space<vmem>>, vector<50x32xf32>
    tpu.vector_store %arg4[%c0_5, %c0_6], %5 {strides = array<i32>} : memref<50x32xf32, #tpu.memory_space<vmem>>, vector<50x32xf32>,
    return
  }
  func.func @transform_0(%arg0: i32) -> (i32, i32) {
    %c0_i32 = arith.constant 0 : i32
    %c0_i32_0 = arith.constant 0 : i32
    return %arg0, %c0_i32 : i32, i32
  }
  func.func @transform_1(%arg0: i32) -> (i32, i32) {
    %c0_i32 = arith.constant 0 : i32
    %c0_i32_0 = arith.constant 0 : i32
    %c0_i32_1 = arith.constant 0 : i32
    return %c0_i32, %c0_i32_0 : i32, i32
  }
  func.func @transform_2(%arg0: i32) -> (i32, i32) {
    %c0_i32 = arith.constant 0 : i32
    %c0_i32_0 = arith.constant 0 : i32
    %c0_i32_1 = arith.constant 0 : i32
    return %c0_i32, %c0_i32_0 : i32, i32
  }
  func.func @transform_3(%arg0: i32) -> (i32, i32) {
    %c0_i32 = arith.constant 0 : i32
    %c0_i32_0 = arith.constant 0 : i32
    return %arg0, %c0_i32 : i32, i32
  }
}

</mosaic_0001>

<bundles_post_ra>
// kernel: _patch_embed_forward.1
= control target key start
LH: loop header
LB: loop body
LE: loop exit
PB: predicated region body
PF: predicated region fallthrough
CT: control target
= control target key end

     0   :  { %v237_v0 = vmov 0.0   ;;  %vm34_vm0 = vcmask 392192   ;;  %vm238_vm1 = vmmov 0   ;;  %vm156_vm2 = vcmask 261120   ;;  %s342_s1 = inlined_call_operand.vmem [shape: f32[48,32], index: 1, kind: input, shape index: {}]   ;;  %s343_s0 = inlined_call_operand.vmem [shape: f32[50,48], index: 0, kind: input, shape index: {}]   ;;  %s344_s2 = inlined_call_operand.vmem [shape: f32[1,32], index: 2, kind: input, shape index: {}]   ;;  %s345_s3 = inlined_call_operand.vmem [shape: f32[50,32], index: 3, kind: output, shape index: {}]  }
   0x1   :  { %190 = vmatprep.subr.mxu0 %v237_v0  ;;  %v26_v1 = vld [vmem:[%s342_s1 + $0x28] sm:$0xff]  ;;  %223 = vmatprep.subr.mxu1 %v237_v0  ;;  %v25_v2 = vld [vmem:[%s342_s1 + $0x20] sm:$0xff]  ;;  %v24_v3 = vld [vmem:[%s342_s1 + $0x18] sm:$0xff]  ;;  %vm163_vm3 = vcmask 254976  }
   0x2   :  { %191 = vmatpush3.msra.mxu0 %v26_v1  ;;  %229 = vmatpush3.msra.mxu1 %v26_v1  ;;  %v23_v4 = vld [vmem:[%s342_s1 + $0x10] sm:$0xff]  ;;  %v22_v5 = vld [vmem:[%s342_s1 + $0x8] sm:$0xff]  ;;  %v21_v6 = vld [vmem:[%s342_s1] sm:$0xff] }
   0x3   :  { %192 = vmatprep.subr.mxu0 %v237_v0  ;;  %224 = vmatprep.subr.mxu1 %v237_v0  ;;  %v14_v7 = vld [vmem:[%s343_s0] sm:$0xff]  ;;  %v15_v9 = vld [vmem:[%s343_s0 + $0x8] sm:$0xff]  ;;  %v16_v11 = vld [vmem:[%s343_s0 + $0x10] sm:$0xff] }
   0x4   :  { %193 = vmatpush3.msra.mxu0 %v25_v2  ;;  %230 = vmatpush3.msra.mxu1 %v25_v2  ;;  %v18_v8 = vld [vmem:[%s343_s0 + $0x20] sm:$0xff]  ;;  %v19_v10 = vld [vmem:[%s343_s0 + $0x28] sm:$0xff]  ;;  %v20_v12 = vld [vmem:[%s343_s0 + $0x30] sm:$0x3] }
   0x5   :  { %194 = vmatprep.subr.mxu0 %v237_v0  ;;  %225 = vmatprep.subr.mxu1 %v237_v0  ;;  %v17_v13 = vld [vmem:[%s343_s0 + $0x18] sm:$0xff]  ;;  %v169_v14 = vld [vmem:[%s344_s2] ss:$0 sm:$0xff] }
   0x6   :  { %195 = vmatpush3.msra.mxu0 %v24_v3  ;;  %231 = vmatpush3.msra.mxu1 %v24_v3 }
   0x7   :  { %196 = vmatprep.subr.mxu0 %v237_v0  ;;  %226 = vmatprep.subr.mxu1 %v237_v0 }
   0x8   :  { %197 = vmatpush3.msra.mxu0 %v23_v4  ;;  %232 = vmatpush3.msra.mxu1 %v23_v4 }
   0x9   :  { %198 = vmatprep.subr.mxu0 %v237_v0  ;;  %227 = vmatprep.subr.mxu1 %v237_v0 }
   0xa   :  { %199 = vmatpush3.msra.mxu0 %v22_v5  ;;  %233 = vmatpush3.msra.mxu1 %v22_v5 }
   0xb   :  { %200 = vmatprep.subr.mxu0 %v237_v0  ;;  %202 = vmatprep.mubr.msk.f32.mxu0 %vm238_vm1, %v237_v0 }
   0xc   :  { %201 = vmatpush3.msra.mxu0 %v21_v6  ;;  %228 = vmatprep.subr.mxu1 %v237_v0 }
   0xd   :  { %203 = vmatmul.mubr.msk.f32.vlgmr.msra.gmra.mxu0 %vm34_vm0, %v14_v7  ;;  %234 = vmatpush3.msra.mxu1 %v21_v6 }
   0xe   :  { %214 = vmatprep.mubr.msk.f32.mxu1 %vm238_vm1, %v237_v0  ;;  %205 = vmatprep.mubr.msk.f32.mxu0 %vm238_vm1, %v237_v0 }
   0xf   :  { %215 = vmatmul.mubr.msk.f32.vlgmr.msra.gmra.mxu1 %vm34_vm0, %v18_v8 }
  0x10   :  { %217 = vmatprep.mubr.msk.f32.mxu1 %vm238_vm1, %v237_v0 }
  0x11   :  { %206 = vmatmul.mubr.msk.f32.gmra.mxu0 %vm34_vm0, %v15_v9 }
  0x12   :  { %208 = vmatprep.mubr.msk.f32.mxu0 %vm238_vm1, %v237_v0 }
  0x13   :  { %218 = vmatmul.mubr.msk.f32.gmra.mxu1 %vm34_vm0, %v19_v10 }
  0x14   :  { %220 = vmatprep.mubr.msk.f32.mxu1 %vm238_vm1, %v237_v0 }
  0x15   :  { %209 = vmatmul.mubr.msk.f32.gmra.mxu0 %vm34_vm0, %v16_v11 }
  0x16   :  { %211 = vmatprep.mubr.msk.f32.mxu0 %vm238_vm1, %v237_v0 }
  0x17   :  { %221 = vmatmul.mubr.msk.f32.gmra.mxu1 %vm34_vm0, %v20_v12 }
  0x19   :  { %212 = vmatmul.mubr.msk.f32.gmra.mxu0 %vm34_vm0, %v17_v13 }
  0xcd   :  { %v122_v15 = vpop.f32.mrf.mxu0 }
  0xce   :  { %v123_v16 = vadd.f32 %v169_v14, %v122_v15 }
  0xcf   :  { %v204_v17 = vpop.f32.mrf.mxu0  ;;  %v142_v18 = vpop.f32.mrf.mxu1 }
  0xd0   :  { %157 = vst.msk [vmem:[%s345_s3] sm:$0xff] %vm156_vm2, %v123_v16  ;;  %v143_v19 = vadd.f32 %v169_v14, %v142_v18 }
  0xd1   :  { %v127_v20 = vpop.f32.mrf.mxu0  ;;  %v216_v21 = vpop.f32.mrf.mxu1 }
  0xd2   :  { %161 = vst.msk [vmem:[%s345_s3 + $0x20] sm:$0xff] %vm156_vm2, %v143_v19  ;;  %v128_v22 = vadd.f32 %v169_v14, %v127_v20 }
  0xd3   :  { %v207_v23 = vpop.f32.mrf.mxu0  ;;  %v147_v24 = vpop.f32.mrf.mxu1 }
  0xd4   :  { %158 = vst.msk [vmem:[%s345_s3 + $0x8] sm:$0xff] %vm156_vm2, %v128_v22  ;;  %v148_v25 = vadd.f32 %v169_v14, %v147_v24 }
  0xd5   :  { %v132_v26 = vpop.f32.mrf.mxu0  ;;  %v219_v27 = vpop.f32.mrf.mxu1 }
  0xd6   :  { %162 = vst.msk [vmem:[%s345_s3 + $0x28] sm:$0xff] %vm156_vm2, %v148_v25  ;;  %v133_v28 = vadd.f32 %v169_v14, %v132_v26 }
  0xd7   :  { %v210_v29 = vpop.f32.mrf.mxu0  ;;  %v152_v30 = vpop.f32.mrf.mxu1 }
  0xd8   :  { %159 = vst.msk [vmem:[%s345_s3 + $0x10] sm:$0xff] %vm156_vm2, %v133_v28  ;;  %v153_v31 = vadd.f32 %v169_v14, %v152_v30 }
  0xd9   :  { %v137_v32 = vpop.f32.mrf.mxu0  ;;  %v222_v33 = vpop.f32.mrf.mxu1 }
  0xda   :  { %164 = vst.msk [vmem:[%s345_s3 + $0x30] sm:$0x3] %vm163_vm3, %v153_v31  ;;  %v138_v34 = vadd.f32 %v169_v14, %v137_v32 }
  0xdb   :  { %v213_v35 = vpop.f32.mrf.mxu0 }
  0xdc   :  { %160 = vst.msk [vmem:[%s345_s3 + $0x18] sm:$0xff] %vm156_vm2, %v138_v34 }

</bundles_post_ra>
